<compile_context>
chip_gen: v5e
topology: v5e:2x2
jax: 0.10.0
libtpu: 0.0.40
codegen_flags: <defaults>
</compile_context>

<pallas_src>
import jax
import jax.numpy as jnp
from jax.experimental import pallas as pl
from jax.experimental.pallas import tpu as pltpu

EPS = 1e-12   # F.normalize default eps
T = 0.5       # temperature from GNet.__init__
INV_T = 1.0 / T

_MIB = 1024 * 1024


def _round_up(v, m):
    return ((v + m - 1) // m) * m


def _cdiv(a, b):
    return -(-a // b)


def _vmem_capacity_bytes():
    """Physical VMEM of the local chip; conservative (v7x-sized) fallback."""
    try:
        info = pltpu.get_tpu_info()
        for name in ("vmem_capacity_bytes", "vmem_size_bytes", "vmem_bytes"):
            cap = getattr(info, name, None)
            if cap:
                return int(cap)
    except Exception:
        pass
    return 64 * _MIB


def _pick_tiles(B_pad, N_pad, dim, in_bpe, out_bpe, budget_bytes, tk=None):
    """Choose (tb, tn, tk) tiles (multiples of (8, 128, 128)) under a VMEM budget.

    tk == dim  => no K split (blocks carry the full feature axis).
    """
    if tk is None:
        # K-split only when even small (tb=256, tn=128) double-buffered
        # full-dim blocks would eat more than half the budget (huge dim /
        # v7x's 64 MiB VMEM); K-tiling keeps tb/tn MXU-sized.
        if 2 * in_bpe * (256 + 128) * dim <= budget_bytes // 2:
            tk = dim
        else:
            nk = _cdiv(dim, 1024)
            tk = _cdiv(dim, nk)
    tk = int(tk)
    if tk >= dim:
        tk = dim                                   # no K split
    else:
        tk = min(_round_up(max(tk, 128), 128), dim)  # lane-aligned K tile
    k_split = tk < dim

    def cost(tb, tn):
        c = 2 * in_bpe * (tb + tn) * tk            # double-buffered x / proto blocks
        c += 2 * out_bpe * tb * tn                 # double-buffered output block
        c += 2 * 4 * (tb + tn)                     # rx / rp blocks
        if k_split:
            c += 4 * tb * tn                       # f32 accumulator scratch
        return c

    # Large batch tile: x is fetched once total, but the prototype is
    # re-streamed B_pad/tb times, so tb is the LAST thing we shrink.
    tb_cap = min(1024, B_pad)

    # 1) Prototype fully resident (tn = N_pad): fetched exactly once.
    tb = tb_cap
    while tb > 256 and cost(tb, N_pad) > budget_bytes:
        tb = max(8, (tb // 2 // 8) * 8)
    if cost(tb, N_pad) <= budget_bytes:
        return tb, N_pad, tk

    # 2) General tiling: shrink tn first, tb last.
    tb, tn = tb_cap, min(512, N_pad)
    while cost(tb, tn) > budget_bytes and (tb > 8 or tn > 128):
        if tn > 128:
            tn = max(128, (tn // 2 // 128) * 128)
        else:
            tb = max(8, (tb // 2 // 8) * 8)
    return tb, tn, tk


def _gnet_kernel(x_ref, p_ref, rx_ref, rp_ref, out_ref):
    # x: (tb, dim)  p: (tn, dim)  rx: (tb, 1) f32  rp: (1, tn) f32
    logits = jax.lax.dot_general(
        x_ref[...], p_ref[...],
        dimension_numbers=(((1,), (1,)), ((), ())),
        preferred_element_type=jnp.float32)
    out_ref[...] = (logits * rx_ref[...] * rp_ref[...]).astype(out_ref.dtype)


def _gnet_kernel_ksplit(x_ref, p_ref, rx_ref, rp_ref, out_ref, acc_ref):
    # Innermost "arbitrary" K axis with an f32 VMEM accumulator.
    k = pl.program_id(2)

    @pl.when(k == 0)
    def _():
        acc_ref[...] = jnp.zeros_like(acc_ref)

    acc_ref[...] += jax.lax.dot_general(
        x_ref[...], p_ref[...],
        dimension_numbers=(((1,), (1,)), ((), ())),
        preferred_element_type=jnp.float32)

    @pl.when(k == pl.num_programs(2) - 1)
    def _():
        out_ref[...] = (acc_ref[...] * rx_ref[...] * rp_ref[...]).astype(out_ref.dtype)


def gnet_forward(x, prototype, *, use_bf16=True, out_dtype=jnp.float32,
                 tk=None, budget_bytes=None):
    B, dim = x.shape
    N, dim_p = prototype.shape
    assert dim == dim_p

    x = x.astype(jnp.float32)
    prototype = prototype.astype(jnp.float32)

    in_dtype = jnp.bfloat16 if use_bf16 else jnp.float32
    in_bpe = 2 if use_bf16 else 4
    out_bpe = jnp.dtype(out_dtype).itemsize

    # Generation-aware VMEM budget (v5e/v6e: 128 MiB, v7x: 64 MiB per TC).
    cap = _vmem_capacity_bytes()
    vmem_limit = max(32 * _MIB, min(100 * _MIB, (3 * cap) // 4))
    if budget_bytes is None:
        budget_bytes = max(8 * _MIB, min(48 * _MIB, vmem_limit - 16 * _MIB))

    B_pad = _round_up(B, 8)
    N_pad = _round_up(N, 128)

    tb, tn, tk = _pick_tiles(B_pad, N_pad, dim, in_bpe, out_bpe, budget_bytes, tk=tk)
    k_split = tk < dim
    dim_pad = _round_up(dim, tk) if k_split else dim

    # Pad only up to (8, 128[, tk]) alignment; skip the copy when aligned.
    def _pad2(a, rows, cols):
        pr, pc = rows - a.shape[0], cols - a.shape[1]
        if pr or pc:
            a = jnp.pad(a, ((0, pr), (0, pc)))
        return a

    x_p = _pad2(x, B_pad, dim_pad)
    proto_p = _pad2(prototype, N_pad, dim_pad)

    # Reciprocal L2 norms hoisted out of the grid (computed in f32 before any
    # bf16 cast); 1/T is folded into the x-side scale.  1/max(||v||, eps)
    # matches F.normalize.  Zero-padded rows give logits exactly 0, so the
    # huge 1/eps scale never produces NaN.
    rx = INV_T / jnp.maximum(
        jnp.sqrt(jnp.sum(x_p * x_p, axis=1, keepdims=True)), EPS)          # (B_pad, 1)
    rp = (1.0 / jnp.maximum(
        jnp.sqrt(jnp.sum(proto_p * proto_p, axis=1, keepdims=True)), EPS)
          ).reshape(1, N_pad)                                              # (1, N_pad)

    # bf16 MXU operands cast wrapper-side: halves HBM->VMEM DMA bytes and
    # removes the per-tile in-kernel cast.
    x_op = x_p.astype(in_dtype)
    proto_op = proto_p.astype(in_dtype)

    grid_b = _cdiv(B_pad, tb)
    grid_n = _cdiv(N_pad, tn)

    if k_split:
        grid = (grid_b, grid_n, dim_pad // tk)
        kernel = _gnet_kernel_ksplit
        in_specs = [
            pl.BlockSpec((tb, tk), lambda i, j, k: (i, k)),
            pl.BlockSpec((tn, tk), lambda i, j, k: (j, k)),
            pl.BlockSpec((tb, 1), lambda i, j, k: (i, 0)),
            pl.BlockSpec((1, tn), lambda i, j, k: (0, j)),
        ]
        out_specs = pl.BlockSpec((tb, tn), lambda i, j, k: (i, j))
        scratch_shapes = [pltpu.VMEM((tb, tn), jnp.float32)]
        dim_sem = ("parallel", "parallel", "arbitrary")
    else:
        grid = (grid_b, grid_n)
        kernel = _gnet_kernel
        in_specs = [
            pl.BlockSpec((tb, tk), lambda i, j: (i, 0)),
            pl.BlockSpec((tn, tk), lambda i, j: (j, 0)),
            pl.BlockSpec((tb, 1), lambda i, j: (i, 0)),
            pl.BlockSpec((1, tn), lambda i, j: (0, j)),
        ]
        out_specs = pl.BlockSpec((tb, tn), lambda i, j: (i, j))
        scratch_shapes = []
        dim_sem = ("parallel", "parallel")

    out = pl.pallas_call(
        kernel,
        out_shape=jax.ShapeDtypeStruct((B_pad, N_pad), out_dtype),
        grid_spec=pltpu.PrefetchScalarGridSpec(
            num_scalar_prefetch=0,
            grid=grid,
            in_specs=in_specs,
            out_specs=out_specs,
            scratch_shapes=scratch_shapes,
        ),
        compiler_params=pltpu.CompilerParams(
            dimension_semantics=dim_sem,
            vmem_limit_bytes=vmem_limit,
        ),
    )(x_op, proto_op, rx, rp)

    # Partial edge blocks may leave garbage in padded rows/cols; sliced off here.
    return out[:B, :N]


def gnet_reference(x, prototype):
    x_n = x / jnp.maximum(jnp.linalg.norm(x, axis=1, keepdims=True), EPS)
    p_n = prototype / jnp.maximum(
        jnp.linalg.norm(prototype, axis=1, keepdims=True), EPS)
    return (x_n @ p_n.T) / T


if __name__ == "__main__":
    key = jax.random.PRNGKey(0)
    k_x, k_p = jax.random.split(key)

    # Small shapes; B / N intentionally not (8, 128)-aligned.
    B, N, dim = 6, 10, 128
    x = jax.random.normal(k_x, (B, dim), dtype=jnp.float32)
    prototype = jax.random.normal(k_p, (N, dim), dtype=jnp.float32)
    ref = gnet_reference(x, prototype)

    # 1) Default path: wrapper-side bf16 operands, prototype fully resident.
    logits = gnet_forward(x, prototype)
    jax.block_until_ready(logits)
    assert logits.shape == (B, N)
    assert jnp.allclose(logits, ref, atol=5e-2, rtol=2e-2), (
        "bf16 fast path mismatch vs reference")

    # 2) Exact-parity f32 path.
    logits_f32 = gnet_forward(x, prototype, use_bf16=False)
    jax.block_until_ready(logits_f32)
    assert jnp.allclose(logits_f32, ref, atol=1e-4, rtol=1e-5), (
        "f32 parity path mismatch vs reference")

    # 3) K-split path (innermost 'arbitrary' axis + f32 VMEM accumulator),
    #    exercised at small shapes by forcing tk < dim.
    B2, N2, dim2 = 12, 9, 256
    x2 = jax.random.normal(k_x, (B2, dim2), dtype=jnp.float32)
    p2 = jax.random.normal(k_p, (N2, dim2), dtype=jnp.float32)
    out2 = gnet_forward(x2, p2, use_bf16=False, tk=128)
    jax.block_until_ready(out2)
    assert jnp.allclose(out2, gnet_reference(x2, p2), atol=1e-4, rtol=1e-5), (
        "K-split path mismatch vs reference")

    # 4) Tiled (non-resident) prototype path with a partial edge block on N,
    #    forced via a tiny VMEM budget override.
    B3, N3, dim3 = 16, 520, 128
    x3 = jax.random.normal(k_x, (B3, dim3), dtype=jnp.float32)
    p3 = jax.random.normal(k_p, (N3, dim3), dtype=jnp.float32)
    out3 = gnet_forward(x3, p3, budget_bytes=380 * 1024, tk=dim3)
    jax.block_until_ready(out3)
    assert out3.shape == (B3, N3)
    assert jnp.allclose(out3, gnet_reference(x3, p3), atol=5e-2, rtol=2e-2), (
        "tiled-prototype path mismatch vs reference")

    # 5) bf16 output dtype (halved logits writeback) smoke test.
    out_bf16 = gnet_forward(x, prototype, out_dtype=jnp.bfloat16)
    jax.block_until_ready(out_bf16)
    assert out_bf16.dtype == jnp.bfloat16 and out_bf16.shape == (B, N)
    assert jnp.allclose(out_bf16.astype(jnp.float32), ref, atol=5e-2, rtol=2e-2), (
        "bf16-output path mismatch vs reference")

    print("KERNEL_OK")
</pallas_src>

<mosaic_0001>
module attributes {stable_mosaic.version = 11 : i64} {
  func.func @_gnet_kernel(%arg0: i32, %arg1: i32, %arg2: memref<8x128xbf16, #tpu.memory_space<vmem>>, %arg3: memref<128x128xbf16, #tpu.memory_space<vmem>>, %arg4: memref<8x1xf32, #tpu.memory_space<vmem>>, %arg5: memref<1x128xf32, #tpu.memory_space<vmem>>, %arg6: memref<8x128xf32, #tpu.memory_space<vmem>>) attributes {dimension_semantics = [#tpu.dimension_semantics<parallel>, #tpu.dimension_semantics<parallel>], iteration_bounds = array<i64: 1, 1>, scalar_prefetch = 0 : i64, scratch_operands = 0 : i64, tpu.core_type = #tpu.core_type<tc>, window_params = [{transform_indices = @transform_0, window_bounds = array<i64: 8, 128>}, {transform_indices = @transform_1, window_bounds = array<i64: 128, 128>}, {transform_indices = @transform_2, window_bounds = array<i64: 8, 1>}, {transform_indices = @transform_3, window_bounds = array<i64: 1, 128>}, {transform_indices = @transform_4, window_bounds = array<i64: 8, 128>}]} {
    %c0 = arith.constant 0 : index
    %c0_0 = arith.constant 0 : index
    %0 = vector.load %arg2[%c0, %c0_0] : memref<8x128xbf16, #tpu.memory_space<vmem>>, vector<8x128xbf16>
    %c0_1 = arith.constant 0 : index
    %c0_2 = arith.constant 0 : index
    %1 = vector.load %arg3[%c0_1, %c0_2] : memref<128x128xbf16, #tpu.memory_space<vmem>>, vector<128x128xbf16>
    %cst = arith.constant dense<0.000000e+00> : vector<8x128xf32>
    %2 = tpu.matmul %0, %1, %cst {dimension_numbers = #tpu.dot_dimension_numbers<[1], [1], [0], [0], [0, 0, 1, 0], [], []>} : vector<8x128xbf16>, vector<128x128xbf16>, vector<8x128xf32> -> vector<8x128xf32>
    %c0_3 = arith.constant 0 : index
    %c0_4 = arith.constant 0 : index
    %3 = vector.load %arg4[%c0_3, %c0_4] : memref<8x1xf32, #tpu.memory_space<vmem>>, vector<8x1xf32>
    %4 = vector.broadcast %3 : vector<8x1xf32> to vector<8x128xf32>
    %5 = arith.mulf %2, %4 : vector<8x128xf32>
    %c0_5 = arith.constant 0 : index
    %c0_6 = arith.constant 0 : index
    %6 = vector.load %arg5[%c0_5, %c0_6] : memref<1x128xf32, #tpu.memory_space<vmem>>, vector<1x128xf32>
    %7 = vector.broadcast %6 : vector<1x128xf32> to vector<8x128xf32>
    %8 = arith.mulf %5, %7 : vector<8x128xf32>
    %c0_7 = arith.constant 0 : index
    %c0_8 = arith.constant 0 : index
    %9 = vector.load %arg6[%c0_7, %c0_8] : memref<8x128xf32, #tpu.memory_space<vmem>>, vector<8x128xf32>
    tpu.vector_store %arg6[%c0_7, %c0_8], %8 {strides = array<i32>} : memref<8x128xf32, #tpu.memory_space<vmem>>, vector<8x128xf32>,
    return
  }
  func.func @transform_0(%arg0: i32, %arg1: i32) -> (i32, i32) {
    %c0_i32 = arith.constant 0 : i32
    %c0_i32_0 = arith.constant 0 : i32
    return %arg0, %c0_i32 : i32, i32
  }
  func.func @transform_1(%arg0: i32, %arg1: i32) -> (i32, i32) {
    %c0_i32 = arith.constant 0 : i32
    %c0_i32_0 = arith.constant 0 : i32
    return %arg1, %c0_i32 : i32, i32
  }
  func.func @transform_2(%arg0: i32, %arg1: i32) -> (i32, i32) {
    %c0_i32 = arith.constant 0 : i32
    %c0_i32_0 = arith.constant 0 : i32
    return %arg0, %c0_i32 : i32, i32
  }
  func.func @transform_3(%arg0: i32, %arg1: i32) -> (i32, i32) {
    %c0_i32 = arith.constant 0 : i32
    %c0_i32_0 = arith.constant 0 : i32
    return %c0_i32, %arg1 : i32, i32
  }
  func.func @transform_4(%arg0: i32, %arg1: i32) -> (i32, i32) {
    %c0_i32 = arith.constant 0 : i32
    return %arg0, %arg1 : i32, i32
  }
}

</mosaic_0001>

<bundles_post_ra>
// kernel: tpu_custom_call.1
= control target key start
LH: loop header
LB: loop body
LE: loop exit
PB: predicated region body
PF: predicated region fallthrough
CT: control target
= control target key end

     0   :  { %9 = vsyncpa [#allocation3], 0  ;;  %s286_s0 = inlined_call_operand.vmem [shape: bf16[8,128], index: 0, kind: input, shape index: {}]   ;;  %s287_s1 = inlined_call_operand.hbm [shape: bf16[128,128], index: 1, kind: input, shape index: {}]   ;;  %s288_s2 = inlined_call_operand.vmem [shape: f32[8,1], index: 2, kind: input, shape index: {}]   ;;  %s289_s3 = inlined_call_operand.vmem [shape: f32[1,128], index: 3, kind: input, shape index: {}]   ;;  %s290_s4 = inlined_call_operand.hbm [shape: f32[8,128], index: 4, kind: output, shape index: {}]  }
   0x1   :  { %10 = vsyncpa [#allocation4], 0  ;;  %s17_s17 = sshll.u32 %s287_s1, 4  ;;  %s241_s18 = smov [#allocation2]   ;;  %s18_s17 = int_to_ptr.hbm [resolvable:$true] %s17_s17 }
   0x2   :  { %s19_s19 = sshll.u32 %s241_s18, 4  ;;  %s242_s20 = smov 64   ;;  %s20_s19 = int_to_ptr.vmem [resolvable:$true] %s19_s19 }
   0x3   :  { %s243_s21 = smov 4  }
   0x4   :  { %25 = dma.hbm_to_vmem [thread:$0]  %s18_s17, 1024, %s20_s19, [#allocation3], %s242_s20, %s242_s20, %s243_s21  }
   0x5   :  { %237 = dma.done.wait [#allocation3], 1024  }
   0x6   :  { %238 = vsyncadd [#allocation3], 4294966272  ;;  %v181_v0 = vld [vmem:[#allocation2 + $0x38] sm:$0xff]  ;;  %v180_v1 = vld [vmem:[#allocation2 + $0x30] sm:$0xff]  ;;  %v244_v6 = vmov 0   ;;  %s132_s30 = sshll.u32 %s290_s4, 4  ;;  %s133_s30 = int_to_ptr.hbm [resolvable:$true] %s132_s30 }
   0x7   :  { %99 = vmatpush.bf16.xpose.msra.mxu0 %v181_v0  ;;  %v179_v2 = vld [vmem:[#allocation2 + $0x28] sm:$0xff]  ;;  %v178_v3 = vld [vmem:[#allocation2 + $0x20] sm:$0xff]  ;;  %v177_v4 = vld [vmem:[#allocation2 + $0x18] sm:$0xff]  ;;  %187 = vset.pattern.permute.xlu0 %v244_v6 }
   0x8   :  { %v112_v5 = vld [vmem:[%s288_s2] sm:$0xff]  ;;  %v176_v7 = vld [vmem:[#allocation2 + $0x10] sm:$0xff]  ;;  %v175_v8 = vld [vmem:[#allocation2 + $0x8] sm:$0xff]  ;;  %s245_s2 = smov [#allocation5]  }
   0x9   :  { %115 = vperm.xlu0 %187, %v112_v5   ;;  %v174_v9 = vld [vmem:[#allocation2] sm:$0xff]  ;;  %s130_s27 = sshll.u32 %s245_s2, 4  ;;  %s131_s27 = int_to_ptr.vmem [resolvable:$true] %s130_s27 }
   0xa   :  { %v34_v10 = vld [vmem:[%s286_s0] sm:$0xf] }
   0xb   :  { %v188_v12 = vld [vmem:[%s289_s3] ss:$0 sm:$0xff] }
   0xf   :  { %100 = vmatpush.bf16.xpose.msra.mxu0 %v180_v1 }
  0x17   :  { %101 = vmatpush.bf16.xpose.msra.mxu0 %v179_v2 }
  0x1f   :  { %102 = vmatpush.bf16.xpose.msra.mxu0 %v178_v3 }
  0x27   :  { %103 = vmatpush.bf16.xpose.msra.mxu0 %v177_v4 }
  0x2f   :  { %104 = vmatpush.bf16.xpose.msra.mxu0 %v176_v7 }
  0x37   :  { %105 = vmatpush.bf16.xpose.msra.mxu0 %v175_v8 }
  0x3f   :  { %106 = vmatpush.bf16.xpose.msra.mxu0 %v174_v9 }
  0x46   :  { %107 = vmatmul.bf16.vlgmr.msra.gmra.mxu0 %v34_v10 }
  0x7b   :  { %v116_v11 = vpop.permute.xlu0 %115 }
  0xc3   :  { %v108_v13 = vpop.f32.mrf.mxu0 }
  0xc4   :  { %v118_v14 = vmul.f32 %v116_v11, %v108_v13 }
  0xc6   :  { %v123_v15 = vmul.f32 %v188_v12, %v118_v14 }
  0xc8   :  { %124 = vst [vmem:[#allocation5] sm:$0xff] %v123_v15 }
  0xc9   :  { %135 = dma.vmem_to_hbm [thread:$0]  %s131_s27, 128, %s133_s30, [#allocation4]  }
  0xcb   :  { %v110_v16 = vpop.f32.mrf.mxu0 }
  0xcc   :  { %239 = dma.done.wait [#allocation4], 128  }
  0xcd   :  { %240 = vsyncadd [#allocation4], 4294967168 }
  0xce   :  { %140 = vsyncpa [#allocation3], 1 }
  0xcf   :  { %141 = vsyncpa [#allocation4], 1 }

</bundles_post_ra>
